<compile_context>
chip_gen: v6e
topology: v6e:2x2x1
jax: 0.10.0
libtpu: 0.0.40
codegen_flags: <defaults>
</compile_context>

<pallas_src>
import functools

import jax
import jax.numpy as jnp
from jax import lax
from jax.experimental import pallas as pl
from jax.experimental.pallas import tpu as pltpu

INPUT_CH = 4
GEO_FEAT_DIM = 15
HIDDEN_DIM_COLOR = 64
NUM_LAYERS_COLOR = 3
IN_DIM = INPUT_CH + GEO_FEAT_DIM   # 19
OUT_DIM = 3


def _round_up(a, b):
    return ((a + b - 1) // b) * b


def color_mlp_kernel(x_ref, w0_ref, w1_ref, w2_ref, o_ref):
    """Fused 3-layer MLP on one row tile, computed transposed: (channels, tm)."""
    x = x_ref[...].astype(jnp.bfloat16)     # (tm, 19)   rows on sublanes
    w0 = w0_ref[...]                        # (64, 19)   bf16, PyTorch (out, in)
    w1 = w1_ref[...]                        # (64, 64)   bf16
    w2 = w2_ref[...]                        # (3, 64)    bf16

    # h1^T = (x @ W0^T)^T = W0 @ x^T  -> contract both operands on their last
    # dim (the standard A @ B^T MXU pattern). Result is (64, tm): rows=channels,
    # lanes=samples -> lane-dense from here on.
    h = lax.dot_general(w0, x, (((1,), (1,)), ((), ())),
                        preferred_element_type=jnp.float32)     # (64, tm) f32
    h = jnp.maximum(h, 0.0).astype(jnp.bfloat16)                # ReLU in f32

    h = lax.dot_general(w1, h, (((1,), (0,)), ((), ())),
                        preferred_element_type=jnp.float32)     # (64, tm) f32
    h = jnp.maximum(h, 0.0).astype(jnp.bfloat16)

    y = lax.dot_general(w2, h, (((1,), (0,)), ((), ())),
                        preferred_element_type=jnp.float32)     # (3, tm) f32
    o_ref[...] = y.astype(o_ref.dtype)                          # no output activation


@functools.partial(jax.jit, static_argnames=("tm",))
def color_net_forward(input_feat, w0, w1, w2, *, tm=1024):
    """ColorNet forward.  input_feat: (N, 19); weights in PyTorch (out, in) layout."""
    N, d_in = input_feat.shape
    assert d_in == IN_DIM
    assert w0.shape == (HIDDEN_DIM_COLOR, IN_DIM)
    assert w1.shape == (HIDDEN_DIM_COLOR, HIDDEN_DIM_COLOR)
    assert w2.shape == (OUT_DIM, HIDDEN_DIM_COLOR)

    # Row tile: multiple of 128, capped at 4096 (VMEM headroom for v7x's 64 MiB),
    # clamped down for small N so we never over-pad.
    tm = max(128, min(int(tm), 4096))
    tm = (tm // 128) * 128
    n_pad = _round_up(N, 128)
    tm_eff = min(tm, n_pad)
    n_pad = _round_up(N, tm_eff)

    x = input_feat
    if n_pad != N:
        x = jnp.pad(x, ((0, n_pad - N), (0, 0)))   # zero rows flow through harmlessly

    # bf16 MXU operands (accumulation stays f32 inside the kernel).
    w0b = w0.astype(jnp.bfloat16)
    w1b = w1.astype(jnp.bfloat16)
    w2b = w2.astype(jnp.bfloat16)

    grid = (n_pad // tm_eff,)
    out_t = pl.pallas_call(
        color_mlp_kernel,
        out_shape=jax.ShapeDtypeStruct((OUT_DIM, n_pad), jnp.float32),
        grid_spec=pltpu.PrefetchScalarGridSpec(
            num_scalar_prefetch=0,
            grid=grid,
            in_specs=[
                # x: tile over rows; last dim equals the full array dim (19).
                pl.BlockSpec((tm_eff, IN_DIM), lambda i: (i, 0)),
                # Weights: full-array blocks, constant index_map -> DMA'd once,
                # VMEM-resident across all grid steps.
                pl.BlockSpec((HIDDEN_DIM_COLOR, IN_DIM), lambda i: (0, 0)),
                pl.BlockSpec((HIDDEN_DIM_COLOR, HIDDEN_DIM_COLOR), lambda i: (0, 0)),
                pl.BlockSpec((OUT_DIM, HIDDEN_DIM_COLOR), lambda i: (0, 0)),
            ],
            # Transposed, lane-dense output: 3 channel rows x tm sample lanes.
            out_specs=pl.BlockSpec((OUT_DIM, tm_eff), lambda i: (0, i)),
        ),
        compiler_params=pltpu.CompilerParams(
            dimension_semantics=("parallel",),   # row tiles are independent
            vmem_limit_bytes=32 * 1024 * 1024,   # headroom for large tm on all chips
        ),
    )(x, w0b, w1b, w2b)

    # (3, n_pad) -> (N, 3); the transpose/slice of a 3xN slab is tiny.
    return out_t[:, :N].T.astype(input_feat.dtype)


def init_params(key):
    """PyTorch nn.Linear-style init (kaiming-uniform bound = 1/sqrt(fan_in)),
    stored in PyTorch's native (out_dim, in_dim) layout."""
    dims = []
    for l in range(NUM_LAYERS_COLOR):
        in_dim = IN_DIM if l == 0 else HIDDEN_DIM_COLOR
        out_dim = OUT_DIM if l == NUM_LAYERS_COLOR - 1 else HIDDEN_DIM_COLOR
        dims.append((out_dim, in_dim))
    keys = jax.random.split(key, len(dims))
    params = []
    for k, (dout, din) in zip(keys, dims):
        bound = 1.0 / jnp.sqrt(float(din))
        params.append(jax.random.uniform(k, (dout, din), jnp.float32, -bound, bound))
    return params


def reference_forward(input_feat, w0, w1, w2):
    """Pure-JAX reference with identical numerics (bf16 operands, f32 accumulation)."""
    x = input_feat.astype(jnp.bfloat16)
    w0b, w1b, w2b = (w.astype(jnp.bfloat16) for w in (w0, w1, w2))
    h = jnp.maximum(jnp.dot(x, w0b.T, preferred_element_type=jnp.float32), 0.0)
    h = jnp.maximum(jnp.dot(h.astype(jnp.bfloat16), w1b.T,
                            preferred_element_type=jnp.float32), 0.0)
    y = jnp.dot(h.astype(jnp.bfloat16), w2b.T, preferred_element_type=jnp.float32)
    return y.astype(input_feat.dtype)


if __name__ == "__main__":
    key = jax.random.PRNGKey(0)
    k_x, k_p = jax.random.split(key)

    # Small demo: N deliberately NOT a multiple of 128 to exercise the padded tail.
    N = 300
    input_feat = jax.random.normal(k_x, (N, IN_DIM), jnp.float32)
    w0, w1, w2 = init_params(k_p)

    out = color_net_forward(input_feat, w0, w1, w2)
    out = jax.block_until_ready(out)
    assert out.shape == (N, OUT_DIM)

    ref = reference_forward(input_feat, w0, w1, w2)
    assert jnp.allclose(out, ref, atol=1e-2, rtol=1e-2), "mismatch vs pure-JAX reference"

    print("KERNEL_OK")
</pallas_src>

<mosaic_0001>
module attributes {stable_mosaic.version = 11 : i64} {
  func.func @color_mlp_kernel(%arg0: i32, %arg1: memref<384x19xf32, #tpu.memory_space<vmem>>, %arg2: memref<64x19xbf16, #tpu.memory_space<vmem>>, %arg3: memref<64x64xbf16, #tpu.memory_space<vmem>>, %arg4: memref<3x64xbf16, #tpu.memory_space<vmem>>, %arg5: memref<3x384xf32, #tpu.memory_space<vmem>>) attributes {dimension_semantics = [#tpu.dimension_semantics<parallel>], iteration_bounds = array<i64: 1>, scalar_prefetch = 0 : i64, scratch_operands = 0 : i64, tpu.core_type = #tpu.core_type<tc>, window_params = [{transform_indices = @transform_0, window_bounds = array<i64: 384, 19>}, {pipeline_mode = #tpu.pipeline_mode<synchronous>, transform_indices = @transform_1, window_bounds = array<i64: 64, 19>}, {pipeline_mode = #tpu.pipeline_mode<synchronous>, transform_indices = @transform_2, window_bounds = array<i64: 64, 64>}, {pipeline_mode = #tpu.pipeline_mode<synchronous>, transform_indices = @transform_3, window_bounds = array<i64: 3, 64>}, {transform_indices = @transform_4, window_bounds = array<i64: 3, 384>}]} {
    %c0 = arith.constant 0 : index
    %c0_0 = arith.constant 0 : index
    %0 = vector.load %arg1[%c0, %c0_0] : memref<384x19xf32, #tpu.memory_space<vmem>>, vector<384x19xf32>
    %1 = arith.truncf %0 : vector<384x19xf32> to vector<384x19xbf16>
    %c0_1 = arith.constant 0 : index
    %c0_2 = arith.constant 0 : index
    %2 = vector.load %arg2[%c0_1, %c0_2] : memref<64x19xbf16, #tpu.memory_space<vmem>>, vector<64x19xbf16>
    %c0_3 = arith.constant 0 : index
    %c0_4 = arith.constant 0 : index
    %3 = vector.load %arg3[%c0_3, %c0_4] : memref<64x64xbf16, #tpu.memory_space<vmem>>, vector<64x64xbf16>
    %c0_5 = arith.constant 0 : index
    %c0_6 = arith.constant 0 : index
    %4 = vector.load %arg4[%c0_5, %c0_6] : memref<3x64xbf16, #tpu.memory_space<vmem>>, vector<3x64xbf16>
    %cst = arith.constant dense<0.000000e+00> : vector<64x384xf32>
    %5 = tpu.matmul %2, %1, %cst {dimension_numbers = #tpu.dot_dimension_numbers<[1], [1], [0], [0], [0, 0, 1, 0], [], []>} : vector<64x19xbf16>, vector<384x19xbf16>, vector<64x384xf32> -> vector<64x384xf32>
    %cst_7 = arith.constant 0.000000e+00 : f32
    %6 = vector.broadcast %cst_7 : f32 to vector<64x384xf32>
    %7 = arith.maximumf %5, %6 : vector<64x384xf32>
    %8 = arith.truncf %7 : vector<64x384xf32> to vector<64x384xbf16>
    %cst_8 = arith.constant dense<0.000000e+00> : vector<64x384xf32>
    %9 = tpu.matmul %3, %8, %cst_8 {dimension_numbers = #tpu.dot_dimension_numbers<[1], [0], [0], [1], [0, 0, 1, 1], [], []>} : vector<64x64xbf16>, vector<64x384xbf16>, vector<64x384xf32> -> vector<64x384xf32>
    %cst_9 = arith.constant 0.000000e+00 : f32
    %10 = vector.broadcast %cst_9 : f32 to vector<64x384xf32>
    %11 = arith.maximumf %9, %10 : vector<64x384xf32>
    %12 = arith.truncf %11 : vector<64x384xf32> to vector<64x384xbf16>
    %cst_10 = arith.constant dense<0.000000e+00> : vector<3x384xf32>
    %13 = tpu.matmul %4, %12, %cst_10 {dimension_numbers = #tpu.dot_dimension_numbers<[1], [0], [0], [1], [0, 0, 1, 1], [], []>} : vector<3x64xbf16>, vector<64x384xbf16>, vector<3x384xf32> -> vector<3x384xf32>
    %c0_11 = arith.constant 0 : index
    %c0_12 = arith.constant 0 : index
    %14 = vector.load %arg5[%c0_11, %c0_12] : memref<3x384xf32, #tpu.memory_space<vmem>>, vector<3x384xf32>
    tpu.vector_store %arg5[%c0_11, %c0_12], %13 {strides = array<i32>} : memref<3x384xf32, #tpu.memory_space<vmem>>, vector<3x384xf32>,
    return
  }
  func.func @transform_0(%arg0: i32) -> (i32, i32) {
    %c0_i32 = arith.constant 0 : i32
    %c0_i32_0 = arith.constant 0 : i32
    return %arg0, %c0_i32 : i32, i32
  }
  func.func @transform_1(%arg0: i32) -> (i32, i32) {
    %c0_i32 = arith.constant 0 : i32
    %c0_i32_0 = arith.constant 0 : i32
    %c0_i32_1 = arith.constant 0 : i32
    return %c0_i32, %c0_i32_0 : i32, i32
  }
  func.func @transform_2(%arg0: i32) -> (i32, i32) {
    %c0_i32 = arith.constant 0 : i32
    %c0_i32_0 = arith.constant 0 : i32
    %c0_i32_1 = arith.constant 0 : i32
    return %c0_i32, %c0_i32_0 : i32, i32
  }
  func.func @transform_3(%arg0: i32) -> (i32, i32) {
    %c0_i32 = arith.constant 0 : i32
    %c0_i32_0 = arith.constant 0 : i32
    %c0_i32_1 = arith.constant 0 : i32
    return %c0_i32, %c0_i32_0 : i32, i32
  }
  func.func @transform_4(%arg0: i32) -> (i32, i32) {
    %c0_i32 = arith.constant 0 : i32
    %c0_i32_0 = arith.constant 0 : i32
    return %c0_i32, %arg0 : i32, i32
  }
}

</mosaic_0001>

<bundles_post_ra>
// kernel: color_net_forward.1
= control target key start
LH: loop header
LB: loop body
LE: loop exit
PB: predicated region body
PF: predicated region fallthrough
CT: control target
= control target key end

     0   :  { %vm127_vm0 = vcmask 154624   ;;  %vm406_vm1 = vcmask 523264   ;;  %vm843_vm2 = vmmov 0   ;;  %s1132_s0 = inlined_call_operand.vmem [shape: f32[384,19], index: 0, kind: input, shape index: {}]   ;;  %s1133_s1 = inlined_call_operand.vmem [shape: bf16[64,19], index: 1, kind: input, shape index: {}]   ;;  %s1134_s2 = inlined_call_operand.vmem [shape: bf16[64,64], index: 2, kind: input, shape index: {}]   ;;  %s1135_s3 = inlined_call_operand.vmem [shape: bf16[3,64], index: 3, kind: input, shape index: {}]   ;;  %s1136_s4 = inlined_call_operand.vmem [shape: f32[3,384], index: 4, kind: output, shape index: {}]  }
   0x1   :  { %v48_v0 = vld [vmem:[%s1132_s0 + $0xf0] sm:$0xff]  ;;  %v49_v1 = vld [vmem:[%s1132_s0 + $0xf8] sm:$0xff]  ;;  %v46_v9 = vld [vmem:[%s1132_s0 + $0xe0] sm:$0xff] }
   0x2   :  { %v64_v2 = vld [vmem:[%s1132_s0 + $0x170] sm:$0xff]  ;;  %v81_v3 = vpack.c.bf16 %v49_v1, %v48_v0  ;;  %v65_v4 = vld [vmem:[%s1132_s0 + $0x178] sm:$0xff]  ;;  %v47_v10 = vld [vmem:[%s1132_s0 + $0xe8] sm:$0xff] }
   0x3   :  { %v32_v5 = vld [vmem:[%s1132_s0 + $0x70] sm:$0xff]  ;;  %v33_v6 = vld [vmem:[%s1132_s0 + $0x78] sm:$0xff]  ;;  %v89_v7 = vpack.c.bf16 %v65_v4, %v64_v2  ;;  %v62_v11 = vld [vmem:[%s1132_s0 + $0x160] sm:$0xff]  ;;  %v80_v12 = vpack.c.bf16 %v47_v10, %v46_v9 }
   0x4   :  { %v73_v8 = vpack.c.bf16 %v33_v6, %v32_v5  ;;  %814 = vmatprep.subr.msk.bf16.mxu0 %vm127_vm0, %v81_v3  ;;  %v63_v13 = vld [vmem:[%s1132_s0 + $0x168] sm:$0xff]  ;;  %v30_v14 = vld [vmem:[%s1132_s0 + $0x60] sm:$0xff]  ;;  %v44_v20 = vld [vmem:[%s1132_s0 + $0xd0] sm:$0xff] }
   0x5   :  { %v31_v15 = vld [vmem:[%s1132_s0 + $0x68] sm:$0xff]  ;;  %822 = vmatprep.subr.msk.bf16.mxu1 %vm127_vm0, %v89_v7  ;;  %v210_v17 = vsel %vm127_vm0, %v89_v7, 0  ;;  %v88_v18 = vpack.c.bf16 %v63_v13, %v62_v11  ;;  %v45_v21 = vld [vmem:[%s1132_s0 + $0xd8] sm:$0xff]  ;;  %v60_v22 = vld [vmem:[%s1132_s0 + $0x150] sm:$0xff] }
   0x6   :  { %v162_v16 = vsel %vm127_vm0, %v73_v8, 0  ;;  %763 = vmatpush3.bf16.xpose.msra.mxu1 %v210_v17  ;;  %v72_v19 = vpack.c.bf16 %v31_v15, %v30_v14  ;;  %v61_v23 = vld [vmem:[%s1132_s0 + $0x158] sm:$0xff]  ;;  %v79_v26 = vpack.c.bf16 %v45_v21, %v44_v20  ;;  %v28_v28 = vld [vmem:[%s1132_s0 + $0x50] sm:$0xff]  ;;  %v42_v31 = vld [vmem:[%s1132_s0 + $0xc0] sm:$0xff] }
   0x7   :  { %714 = vmatpush3.bf16.xpose.msra.mxu0 %v162_v16  ;;  %823 = vmatprep.subr.msk.bf16.mxu1 %vm127_vm0, %v88_v18  ;;  %v207_v25 = vsel %vm127_vm0, %v88_v18, 0  ;;  %v87_v27 = vpack.c.bf16 %v61_v23, %v60_v22  ;;  %v29_v29 = vld [vmem:[%s1132_s0 + $0x58] sm:$0xff]  ;;  %v43_v32 = vld [vmem:[%s1132_s0 + $0xc8] sm:$0xff]  ;;  %v58_v33 = vld [vmem:[%s1132_s0 + $0x140] sm:$0xff] }
   0x8   :  { %815 = vmatprep.subr.msk.bf16.mxu0 %vm127_vm0, %v80_v12  ;;  %v159_v24 = vsel %vm127_vm0, %v72_v19, 0  ;;  %v71_v30 = vpack.c.bf16 %v29_v29, %v28_v28  ;;  %v59_v34 = vld [vmem:[%s1132_s0 + $0x148] sm:$0xff]  ;;  %v948_v35 = vld [vmem:[%s1133_s1] sm:$0xff]   ;;  %v78_v38 = vpack.c.bf16 %v43_v32, %v42_v31  ;;  %v40_v43 = vld [vmem:[%s1132_s0 + $0xb0] sm:$0xff]  ;;  %v841_v29 = vmov 0  }
   0x9   :  { %v204_v37 = vsel %vm127_vm0, %v87_v27, 0  ;;  %v86_v39 = vpack.c.bf16 %v59_v34, %v58_v33  ;;  %v26_v40 = vld [vmem:[%s1132_s0 + $0x40] sm:$0xff]  ;;  %v27_v41 = vld [vmem:[%s1132_s0 + $0x48] sm:$0xff]  ;;  %729 = vmatprep.mubr.msk.bf16.mxu0 %vm127_vm0, %v948_v35  ;;  %778 = vmatprep.mubr.msk.bf16.mxu1 %vm127_vm0, %v948_v35  ;;  %v41_v44 = vld [vmem:[%s1132_s0 + $0xb8] sm:$0xff] }
   0xa   :  { %v156_v36 = vsel %vm127_vm0, %v71_v30, 0  ;;  %v70_v42 = vpack.c.bf16 %v27_v41, %v26_v40  ;;  %v56_v45 = vld [vmem:[%s1132_s0 + $0x130] sm:$0xff]  ;;  %v57_v46 = vld [vmem:[%s1132_s0 + $0x138] sm:$0xff]  ;;  %v77_v49 = vpack.c.bf16 %v41_v44, %v40_v43  ;;  %v38_v54 = vld [vmem:[%s1132_s0 + $0xa0] sm:$0xff] }
   0xb   :  { %v201_v48 = vsel %vm127_vm0, %v86_v39, 0  ;;  %v85_v50 = vpack.c.bf16 %v57_v46, %v56_v45  ;;  %v24_v51 = vld [vmem:[%s1132_s0 + $0x30] sm:$0xff]  ;;  %v25_v52 = vld [vmem:[%s1132_s0 + $0x38] sm:$0xff]  ;;  %v39_v55 = vld [vmem:[%s1132_s0 + $0xa8] sm:$0xff] }
   0xc   :  { %v153_v47 = vsel %vm127_vm0, %v70_v42, 0  ;;  %v69_v53 = vpack.c.bf16 %v25_v52, %v24_v51  ;;  %v54_v56 = vld [vmem:[%s1132_s0 + $0x120] sm:$0xff]  ;;  %v55_v57 = vld [vmem:[%s1132_s0 + $0x128] sm:$0xff]  ;;  %v76_v60 = vpack.c.bf16 %v39_v55, %v38_v54  ;;  %v36_v1 = vld [vmem:[%s1132_s0 + $0x90] sm:$0xff] }
   0xd   :  { %v198_v59 = vsel %vm127_vm0, %v85_v50, 0  ;;  %v84_v61 = vpack.c.bf16 %v55_v57, %v54_v56  ;;  %v22_v62 = vld [vmem:[%s1132_s0 + $0x20] sm:$0xff]  ;;  %v23_v63 = vld [vmem:[%s1132_s0 + $0x28] sm:$0xff]  ;;  %v37_v2 = vld [vmem:[%s1132_s0 + $0x98] sm:$0xff] }
   0xe   :  { %765 = vmatpush3.bf16.xpose.msra.mxu1 %v207_v25  ;;  %v150_v58 = vsel %vm127_vm0, %v69_v53, 0  ;;  %v68_v0 = vpack.c.bf16 %v23_v63, %v22_v62  ;;  %v52_v3 = vld [vmem:[%s1132_s0 + $0x110] sm:$0xff]  ;;  %v53_v4 = vld [vmem:[%s1132_s0 + $0x118] sm:$0xff]  ;;  %v75_v7 = vpack.c.bf16 %v37_v2, %v36_v1  ;;  %v34_v12 = vld [vmem:[%s1132_s0 + $0x80] sm:$0xff] }
   0xf   :  { %716 = vmatpush3.bf16.xpose.msra.mxu0 %v159_v24  ;;  %824 = vmatprep.subr.msk.bf16.mxu1 %vm127_vm0, %v87_v27  ;;  %v195_v6 = vsel %vm127_vm0, %v84_v61, 0  ;;  %v83_v8 = vpack.c.bf16 %v53_v4, %v52_v3  ;;  %v20_v9 = vld [vmem:[%s1132_s0 + $0x10] sm:$0xff]  ;;  %v21_v10 = vld [vmem:[%s1132_s0 + $0x18] sm:$0xff]  ;;  %v35_v13 = vld [vmem:[%s1132_s0 + $0x88] sm:$0xff] }
  0x10   :  { %816 = vmatprep.subr.msk.bf16.mxu0 %vm127_vm0, %v79_v26  ;;  %v147_v5 = vsel %vm127_vm0, %v68_v0, 0  ;;  %v67_v11 = vpack.c.bf16 %v21_v10, %v20_v9  ;;  %v50_v14 = vld [vmem:[%s1132_s0 + $0x100] sm:$0xff]  ;;  %v51_v15 = vld [vmem:[%s1132_s0 + $0x108] sm:$0xff]  ;;  %v74_v18 = vpack.c.bf16 %v35_v13, %v34_v12  ;;  %v835_v26 = vld [vmem:[%s1133_s1 + $0x10] sm:$0xff]  }
  0x11   :  { %v192_v17 = vsel %vm127_vm0, %v83_v8, 0  ;;  %v82_v19 = vpack.c.bf16 %v51_v15, %v50_v14  ;;  %v18_v20 = vld [vmem:[%s1132_s0] sm:$0xff]  ;;  %v19_v21 = vld [vmem:[%s1132_s0 + $0x8] sm:$0xff]  ;;  %v836_v27 = vld [vmem:[%s1133_s1 + $0x18] sm:$0xff]  }
  0x12   :  { %v144_v16 = vsel %vm127_vm0, %v67_v11, 0  ;;  %v66_v22 = vpack.c.bf16 %v19_v21, %v18_v20  ;;  %v834_v25 = vld [vmem:[%s1133_s1 + $0x8] sm:$0xff]   ;;  %v1077_v28 = vld [vmem:[%s1134_s2] sm:$0xff]   ;;  %v839_v4 = vld [vmem:[%s1134_s2 + $0x10] sm:$0xff]  }
  0x13   :  { %v189_v24 = vsel %vm127_vm0, %v82_v19, 0  ;;  %v838_v1 = vld [vmem:[%s1134_s2 + $0x8] sm:$0xff]  }
  0x14   :  { %v141_v23 = vsel %vm127_vm0, %v66_v22, 0 }
  0x16   :  { %767 = vmatpush3.bf16.xpose.msra.mxu1 %v204_v37 }
  0x17   :  { %718 = vmatpush3.bf16.xpose.msra.mxu0 %v156_v36  ;;  %825 = vmatprep.subr.msk.bf16.mxu1 %vm127_vm0, %v86_v39 }
  0x18   :  { %817 = vmatprep.subr.msk.bf16.mxu0 %vm127_vm0, %v78_v38 }
  0x1e   :  { %769 = vmatpush3.bf16.xpose.msra.mxu1 %v201_v48 }
  0x1f   :  { %720 = vmatpush3.bf16.xpose.msra.mxu0 %v153_v47  ;;  %826 = vmatprep.subr.msk.bf16.mxu1 %vm127_vm0, %v85_v50 }
  0x20   :  { %818 = vmatprep.subr.msk.bf16.mxu0 %vm127_vm0, %v77_v49 }
  0x26   :  { %771 = vmatpush3.bf16.xpose.msra.mxu1 %v198_v59 }
  0x27   :  { %722 = vmatpush3.bf16.xpose.msra.mxu0 %v150_v58  ;;  %827 = vmatprep.subr.msk.bf16.mxu1 %vm127_vm0, %v84_v61 }
  0x28   :  { %819 = vmatprep.subr.msk.bf16.mxu0 %vm127_vm0, %v76_v60 }
  0x2e   :  { %773 = vmatpush3.bf16.xpose.msra.mxu1 %v195_v6 }
  0x2f   :  { %724 = vmatpush3.bf16.xpose.msra.mxu0 %v147_v5  ;;  %828 = vmatprep.subr.msk.bf16.mxu1 %vm127_vm0, %v83_v8 }
  0x30   :  { %820 = vmatprep.subr.msk.bf16.mxu0 %vm127_vm0, %v75_v7 }
  0x36   :  { %775 = vmatpush3.bf16.xpose.msra.mxu1 %v192_v17  ;;  %v840_v17 = vld [vmem:[%s1134_s2 + $0x18] sm:$0xff]  }
  0x37   :  { %726 = vmatpush3.bf16.xpose.msra.mxu0 %v144_v16  ;;  %829 = vmatprep.subr.msk.bf16.mxu1 %vm127_vm0, %v82_v19 }
  0x38   :  { %821 = vmatprep.subr.msk.bf16.mxu0 %vm127_vm0, %v74_v18 }
  0x3e   :  { %777 = vmatpush3.bf16.xpose.msra.mxu1 %v189_v24 }
  0x3f   :  { %728 = vmatpush3.bf16.xpose.msra.mxu0 %v141_v23 }
  0x45   :  { %779 = vmatmul.mubr.msk.bf16.vlgmr.msra.gmra.mxu1 %vm127_vm0, %v834_v25 }
  0x46   :  { %730 = vmatmul.mubr.msk.bf16.vlgmr.msra.gmra.mxu0 %vm127_vm0, %v948_v35  ;;  %782 = vmatprep.mubr.msk.bf16.mxu1 %vm127_vm0, %v835_v26 }
  0x47   :  { %731 = vmatprep.mubr.msk.bf16.mxu0 %vm127_vm0, %v834_v25 }
  0x4d   :  { %783 = vmatmul.mubr.msk.bf16.gmra.mxu1 %vm127_vm0, %v836_v27 }
  0x4e   :  { %732 = vmatmul.mubr.msk.bf16.gmra.mxu0 %vm127_vm0, %v834_v25  ;;  %451 = vmatprep.mubr.bf16.mxu1 %v841_v29 }
  0x4f   :  { %733 = vmatprep.mubr.msk.bf16.mxu0 %vm127_vm0, %v835_v26 }
  0x56   :  { %734 = vmatmul.mubr.msk.bf16.gmra.mxu0 %vm127_vm0, %v835_v26 }
  0x57   :  { %735 = vmatprep.mubr.msk.bf16.mxu0 %vm127_vm0, %v836_v27 }
  0x5e   :  { %736 = vmatmul.mubr.msk.bf16.gmra.mxu0 %vm127_vm0, %v836_v27 }
  0x5f   :  { %794 = vmatprep.mubr.msk.bf16.mxu0 %vm406_vm1, %v1077_v28 }
 0x105   :  { %v780_v31 = vpop.f32.mrf.mxu1 }
 0x106   :  { %v1082_v30 = vpop.f32.mrf.mxu0  ;;  %v358_v49 = vmax.f32 %v780_v31, 0.0 }
 0x107   :  { %v319_v33 = vpop.f32.mrf.mxu1  ;;  %v350_v27 = vmax.f32 %v1082_v30, 0.0  ;;  %v842_v30 = vmov 0.0  }
 0x108   :  { %v1084_v32 = vpop.f32.mrf.mxu0  ;;  %v352_v56 = vmax.f32 %v319_v33, 0.0 }
 0x109   :  { %v781_v35 = vpop.f32.mrf.mxu1  ;;  %v351_v23 = vmax.f32 %v1084_v32, 0.0 }
 0x10a   :  { %v1086_v34 = vpop.f32.mrf.mxu0  ;;  %v361_v50 = vmax.f32 %v781_v35, 0.0 }
 0x10b   :  { %v322_v37 = vpop.f32.mrf.mxu1  ;;  %v353_v24 = vmax.f32 %v1086_v34, 0.0 }
 0x10c   :  { %v1088_v36 = vpop.f32.mrf.mxu0  ;;  %v379_v57 = vpack.c.bf16 %v361_v50, %v358_v49  ;;  %v355_v58 = vmax.f32 %v322_v37, 0.0 }
 0x10d   :  { %v784_v39 = vpop.f32.mrf.mxu1  ;;  %v354_v20 = vmax.f32 %v1088_v36, 0.0  ;;  %v374_v31 = vpack.c.bf16 %v353_v24, %v350_v27 }
 0x10e   :  { %v1090_v38 = vpop.f32.mrf.mxu0  ;;  %v370_v42 = vmax.f32 %v784_v39, 0.0  ;;  %v376_v61 = vpack.c.bf16 %v355_v58, %v352_v56  ;;  %v106_v56 = vld [vmem:[%s1135_s3] sm:$0x3] }
 0x10f   :  { %v335_v41 = vpop.f32.mrf.mxu1  ;;  %v356_v22 = vmax.f32 %v1090_v38, 0.0  ;;  %v375_v26 = vpack.c.bf16 %v354_v20, %v351_v23 }
 0x110   :  { %v258_v40 = vpop.f32.mrf.mxu0  ;;  %v364_v45 = vmax.f32 %v335_v41, 0.0 }
 0x111   :  { %v785_v44 = vpop.f32.mrf.mxu1  ;;  %v357_v16 = vmax.f32 %v258_v40, 0.0 }
 0x112   :  { %v1092_v43 = vpop.f32.mrf.mxu0  ;;  %v373_v46 = vmax.f32 %v785_v44, 0.0 }
 0x113   :  { %v338_v48 = vpop.f32.mrf.mxu1  ;;  %v359_v18 = vmax.f32 %v1092_v43, 0.0 }
 0x114   :  { %v262_v47 = vpop.f32.mrf.mxu0  ;;  %v385_v51 = vpack.c.bf16 %v373_v46, %v370_v42  ;;  %v367_v52 = vmax.f32 %v338_v48, 0.0 }
 0x115   :  { %v360_v13 = vmax.f32 %v262_v47, 0.0  ;;  %v377_v25 = vpack.c.bf16 %v359_v18, %v356_v22 }
 0x116   :  { %v266_v53 = vpop.f32.mrf.mxu0  ;;  %v382_v54 = vpack.c.bf16 %v367_v52, %v364_v45  ;;  %786 = vmatprep.subr.bf16.mxu0 %v385_v51 }
 0x117   :  { %787 = vmatpush3.bf16.msra.mxu0 %v385_v51  ;;  %v362_v15 = vmax.f32 %v266_v53, 0.0  ;;  %v378_v21 = vpack.c.bf16 %v360_v13, %v357_v16 }
 0x118   :  { %v268_v55 = vpop.f32.mrf.mxu0  ;;  %788 = vmatprep.subr.bf16.mxu0 %v382_v54 }
 0x119   :  { %v363_v9 = vmax.f32 %v268_v55, 0.0 }
 0x11a   :  { %v270_v59 = vpop.f32.mrf.mxu0 }
 0x11b   :  { %789 = vmatpush3.bf16.msra.mxu0 %v382_v54  ;;  %v365_v11 = vmax.f32 %v270_v59, 0.0 }
 0x11c   :  { %v272_v60 = vpop.f32.mrf.mxu0  ;;  %790 = vmatprep.subr.bf16.mxu0 %v379_v57 }
 0x11d   :  { %v366_v5 = vmax.f32 %v272_v60, 0.0  ;;  %v380_v19 = vpack.c.bf16 %v365_v11, %v362_v15 }
 0x11e   :  { %v276_v62 = vpop.f32.mrf.mxu0 }
 0x11f   :  { %791 = vmatpush3.bf16.msra.mxu0 %v379_v57  ;;  %v368_v8 = vmax.f32 %v276_v62, 0.0  ;;  %v381_v14 = vpack.c.bf16 %v366_v5, %v363_v9 }
 0x120   :  { %v278_v63 = vpop.f32.mrf.mxu0  ;;  %792 = vmatprep.subr.bf16.mxu0 %v376_v61 }
 0x121   :  { %v369_v6 = vmax.f32 %v278_v63, 0.0 }
 0x122   :  { %v280_v0 = vpop.f32.mrf.mxu0 }
 0x123   :  { %v371_v2 = vmax.f32 %v280_v0, 0.0  ;;  %793 = vmatpush3.bf16.msra.mxu0 %v376_v61 }
 0x124   :  { %v282_v3 = vpop.f32.mrf.mxu0 }
 0x125   :  { %v372_v7 = vmax.f32 %v282_v3, 0.0  ;;  %v383_v12 = vpack.c.bf16 %v371_v2, %v368_v8 }
 0x126   :  { %795 = vmatmul.mubr.msk.bf16.vlgmr.msra.gmra.mxu0 %vm406_vm1, %v838_v1 }
 0x127   :  { %v384_v10 = vpack.c.bf16 %v372_v7, %v369_v6  ;;  %798 = vmatprep.mubr.msk.bf16.mxu0 %vm406_vm1, %v839_v4 }
 0x129   :  { %427 = vmatprep.subr.bf16.mxu1 %v384_v10 }
 0x12a   :  { %428 = vmatpush1.bf16.msra.mxu1 %v383_v12 }
 0x12b   :  { %429 = vmatprep.subr.bf16.mxu1 %v381_v14 }
 0x12e   :  { %430 = vmatpush1.bf16.msra.mxu1 %v380_v19  ;;  %799 = vmatmul.mubr.msk.bf16.gmra.mxu0 %vm406_vm1, %v840_v17 }
 0x12f   :  { %431 = vmatprep.subr.bf16.mxu1 %v378_v21  ;;  %628 = vmatprep.mubr.bf16.mxu0 %v841_v29 }
 0x132   :  { %432 = vmatpush1.bf16.msra.mxu1 %v377_v25 }
 0x133   :  { %433 = vmatprep.subr.bf16.mxu1 %v375_v26 }
 0x136   :  { %434 = vmatpush1.bf16.msra.mxu1 %v374_v31 }
 0x137   :  { %802 = vmatprep.subr.bf16.mxu1 %v842_v30 }
 0x139   :  { %703 = vmatmul.mubr.msk.bf16.vlgmr.msra.gmra.mxu1 %vm406_vm1, %v1077_v28 }
 0x13a   :  { %461 = vmatprep.mubr.bf16.mxu1 %v841_v29 }
 0x141   :  { %704 = vmatmul.mubr.msk.bf16.gmra.mxu1 %vm406_vm1, %v838_v1 }
 0x142   :  { %471 = vmatprep.mubr.bf16.mxu1 %v841_v29 }
 0x149   :  { %705 = vmatmul.mubr.msk.bf16.gmra.mxu1 %vm406_vm1, %v839_v4 }
 0x14a   :  { %481 = vmatprep.mubr.bf16.mxu1 %v841_v29 }
 0x151   :  { %706 = vmatmul.mubr.msk.bf16.gmra.mxu1 %vm406_vm1, %v840_v17 }
 0x152   :  { %810 = vmatprep.mubr.msk.bf16.mxu1 %vm843_vm2, %v842_v30 }
 0x1e6   :  { %v796_v32 = vpop.f32.mrf.mxu0 }
 0x1e7   :  { %v565_v29 = vmax.f32 %v796_v32, 0.0 }
 0x1e8   :  { %v526_v33 = vpop.f32.mrf.mxu0 }
 0x1e9   :  { %v559_v48 = vmax.f32 %v526_v33, 0.0 }
 0x1ea   :  { %v797_v34 = vpop.f32.mrf.mxu0 }
 0x1eb   :  { %v568_v44 = vmax.f32 %v797_v34, 0.0 }
 0x1ec   :  { %v529_v28 = vpop.f32.mrf.mxu0 }
 0x1ed   :  { %v586_v49 = vpack.c.bf16 %v568_v44, %v565_v29  ;;  %v562_v50 = vmax.f32 %v529_v28, 0.0 }
 0x1ee   :  { %v800_v35 = vpop.f32.mrf.mxu0 }
 0x1ef   :  { %v577_v37 = vmax.f32 %v800_v35, 0.0  ;;  %v583_v53 = vpack.c.bf16 %v562_v50, %v559_v48 }
 0x1f0   :  { %v542_v36 = vpop.f32.mrf.mxu0 }
 0x1f1   :  { %v571_v39 = vmax.f32 %v542_v36, 0.0 }
 0x1f2   :  { %v801_v38 = vpop.f32.mrf.mxu0 }
 0x1f3   :  { %v580_v40 = vmax.f32 %v801_v38, 0.0 }
 0x1f4   :  { %v545_v41 = vpop.f32.mrf.mxu0 }
 0x1f5   :  { %v592_v42 = vpack.c.bf16 %v580_v40, %v577_v37  ;;  %v574_v43 = vmax.f32 %v545_v41, 0.0 }
 0x1f7   :  { %v589_v45 = vpack.c.bf16 %v574_v43, %v571_v39  ;;  %803 = vmatpush3.bf16.msra.mxu1 %v592_v42 }
 0x1f8   :  { %804 = vmatprep.subr.bf16.mxu1 %v842_v30 }
 0x1f9   :  { %v453_v46 = vpop.f32.mrf.mxu1 }
 0x1fa   :  { %v557_v25 = vmax.f32 %v453_v46, 0.0 }
 0x1fb   :  { %v455_v47 = vpop.f32.mrf.mxu1  ;;  %805 = vmatpush3.bf16.msra.mxu1 %v589_v45 }
 0x1fc   :  { %806 = vmatprep.subr.bf16.mxu1 %v842_v30  ;;  %v558_v21 = vmax.f32 %v455_v47, 0.0 }
 0x1fd   :  { %v457_v51 = vpop.f32.mrf.mxu1 }
 0x1fe   :  { %v560_v22 = vmax.f32 %v457_v51, 0.0 }
 0x1ff   :  { %v459_v52 = vpop.f32.mrf.mxu1  ;;  %807 = vmatpush3.bf16.msra.mxu1 %v586_v49 }
 0x200   :  { %808 = vmatprep.subr.bf16.mxu1 %v842_v30  ;;  %v561_v18 = vmax.f32 %v459_v52, 0.0  ;;  %v581_v26 = vpack.c.bf16 %v560_v22, %v557_v25 }
 0x201   :  { %v463_v54 = vpop.f32.mrf.mxu1 }
 0x202   :  { %v563_v20 = vmax.f32 %v463_v54, 0.0  ;;  %v582_v24 = vpack.c.bf16 %v561_v18, %v558_v21 }
 0x203   :  { %v465_v55 = vpop.f32.mrf.mxu1  ;;  %809 = vmatpush3.bf16.msra.mxu1 %v583_v53 }
 0x204   :  { %v564_v15 = vmax.f32 %v465_v55, 0.0 }
 0x205   :  { %v467_v57 = vpop.f32.mrf.mxu1 }
 0x206   :  { %811 = vmatmul.mubr.msk.bf16.vlgmr.msra.gmra.mxu1 %vm406_vm1, %v106_v56  ;;  %v566_v16 = vmax.f32 %v467_v57, 0.0 }
 0x207   :  { %v469_v58 = vpop.f32.mrf.mxu1 }
 0x208   :  { %v567_v12 = vmax.f32 %v469_v58, 0.0  ;;  %v584_v23 = vpack.c.bf16 %v566_v16, %v563_v20 }
 0x209   :  { %v473_v59 = vpop.f32.mrf.mxu1 }
 0x20a   :  { %v569_v14 = vmax.f32 %v473_v59, 0.0  ;;  %v585_v19 = vpack.c.bf16 %v567_v12, %v564_v15 }
 0x20b   :  { %v475_v60 = vpop.f32.mrf.mxu1 }
 0x20c   :  { %v570_v8 = vmax.f32 %v475_v60, 0.0 }
 0x20d   :  { %v477_v61 = vpop.f32.mrf.mxu1 }
 0x20e   :  { %v572_v10 = vmax.f32 %v477_v61, 0.0 }
 0x20f   :  { %v479_v62 = vpop.f32.mrf.mxu1 }
 0x210   :  { %v573_v4 = vmax.f32 %v479_v62, 0.0  ;;  %v587_v17 = vpack.c.bf16 %v572_v10, %v569_v14 }
 0x211   :  { %v483_v63 = vpop.f32.mrf.mxu1 }
 0x212   :  { %v575_v7 = vmax.f32 %v483_v63, 0.0  ;;  %v588_v13 = vpack.c.bf16 %v573_v4, %v570_v8 }
 0x213   :  { %v485_v0 = vpop.f32.mrf.mxu1 }
 0x214   :  { %v576_v5 = vmax.f32 %v485_v0, 0.0 }
 0x215   :  { %v487_v1 = vpop.f32.mrf.mxu1 }
 0x216   :  { %v578_v2 = vmax.f32 %v487_v1, 0.0 }
 0x217   :  { %v489_v3 = vpop.f32.mrf.mxu1 }
 0x218   :  { %v579_v6 = vmax.f32 %v489_v3, 0.0  ;;  %v590_v11 = vpack.c.bf16 %v578_v2, %v575_v7 }
 0x21a   :  { %v591_v9 = vpack.c.bf16 %v579_v6, %v576_v5 }
 0x21c   :  { %604 = vmatprep.subr.bf16.mxu0 %v591_v9 }
 0x21d   :  { %605 = vmatpush1.bf16.msra.mxu0 %v590_v11 }
 0x21e   :  { %606 = vmatprep.subr.bf16.mxu0 %v588_v13 }
 0x221   :  { %607 = vmatpush1.bf16.msra.mxu0 %v587_v17 }
 0x222   :  { %608 = vmatprep.subr.bf16.mxu0 %v585_v19 }
 0x225   :  { %609 = vmatpush1.bf16.msra.mxu0 %v584_v23 }
 0x226   :  { %610 = vmatprep.subr.bf16.mxu0 %v582_v24 }
 0x229   :  { %611 = vmatpush1.bf16.msra.mxu0 %v581_v26 }
 0x22c   :  { %711 = vmatmul.mubr.msk.bf16.vlgmr.msra.gmra.mxu0 %vm406_vm1, %v106_v56 }
 0x2c6   :  { %v671_v27 = vpop.f32.mrf.mxu1 }
 0x2c7   :  { %682 = vst [vmem:[%s1136_s4 + $0x8] sm:$0x7] %v671_v27 }
 0x2c8   :  { %v812_v31 = vpop.f32.mrf.mxu1 }
 0x2ca   :  { %v674_v30 = vpop.f32.mrf.mxu1 }
 0x2cc   :  { %v813_v32 = vpop.f32.mrf.mxu1 }
 0x2ec   :  { %v630_v33 = vpop.f32.mrf.mxu0 }
 0x2ee   :  { %v632_v34 = vpop.f32.mrf.mxu0 }
 0x2ef   :  { %v679_v28 = vcombine.low %v630_v33, %v632_v34 }
 0x2f0   :  { %v634_v35 = vpop.f32.mrf.mxu0 }
 0x2f1   :  { %681 = vst [vmem:[%s1136_s4] sm:$0x77] %v679_v28 }
 0x2f2   :  { %v635_v36 = vpop.f32.mrf.mxu0 }

</bundles_post_ra>
